<compile_context>
chip_gen: v7x
topology: tpu7x:2x2x1
jax: 0.10.0
libtpu: 0.0.40
codegen_flags: <defaults>
</compile_context>

<pallas_src>
import functools

import jax
import jax.numpy as jnp
import numpy as np
from jax import lax
from jax.experimental import pallas as pl
from jax.experimental.pallas import tpu as pltpu

K = 3    # kernel size
PAD = 1  # padding


def _sep_masks(H, W, b_tile, L):
    """Separable 0/1 boundary masks over the (padded) flat pixel axis.

    rows 0..2 : row-validity for dr in (-1, 0, +1)  (pixel row + dr inside the image)
    rows 3..5 : col-validity for dc in (-1, 0, +1)  (pixel col + dc inside the image)
    Lane positions >= b_tile*H*W are padding and fully masked out.
    """
    HW = H * W
    pos = np.arange(L)
    real = (pos < b_tile * HW).astype(np.float32)
    col = pos % W
    row = (pos % HW) // W
    m = np.zeros((6, L), np.float32)
    for i, d in enumerate((-1, 0, 1)):
        m[i] = real * ((row + d >= 0) & (row + d < H))
        m[3 + i] = real * ((col + d >= 0) & (col + d < W))
    return m


def crr_forward_kernel(x_ref, w1_ref, w2_ref, m_ref, o_ref, *, W):
    L = x_ref.shape[-1]

    xf = x_ref[0]              # (1, L)  pixels on the lane axis (lane-dense)
    m = m_ref[...]             # (6, L)
    mR = m[0:3]                # row-validity masks, rows dr = -1, 0, +1
    mC = m[3:6]                # col-validity masks, rows dc = -1, 0, +1

    # ---- conv (1 -> C, k=3, pad=1) as an im2col MXU matmul ---------------------------------
    # row-offset gathers: xA[dr, p] = xf[p + dr*W], masked by row validity
    x_up = pltpu.roll(xf, shift=W, axis=1)            # dr = -1
    x_dn = pltpu.roll(xf, shift=L - W, axis=1)        # dr = +1
    xAm = jnp.concatenate([x_up, xf, x_dn], axis=0) * mR                  # (3, L)

    # column-offset gathers: one 3-row roll per dc group, masked by col validity
    g_m1 = pltpu.roll(xAm, shift=1, axis=1) * mC[0:1]                     # dc = -1
    g_p1 = pltpu.roll(xAm, shift=L - 1, axis=1) * mC[2:3]                 # dc = +1
    x9 = jnp.concatenate([g_m1, xAm * mC[1:2], g_p1], axis=0)             # (9, L), row = dc*3+dr

    z = jnp.dot(w1_ref[...], x9, preferred_element_type=jnp.float32)      # (C, L)
    z = jnp.maximum(z, 0.0)                                               # ReLU

    # ---- adjoint conv (C -> 1) --------------------------------------------------------------
    s = jnp.dot(w2_ref[...], z, preferred_element_type=jnp.float32)       # (9, L)

    # undo the column offsets group-wise, mask, sum over dc (2 whole-block adds)
    t_m1 = pltpu.roll(s[0:3], shift=1, axis=1) * mC[0:1]
    t_p1 = pltpu.roll(s[6:9], shift=L - 1, axis=1) * mC[2:3]
    g3 = t_m1 + s[3:6] * mC[1:2] + t_p1                                   # (3, L), rows dr

    # undo the row offsets, mask, reduce the 3 dr rows
    i_up = pltpu.roll(g3[0:1], shift=W, axis=1)
    i_dn = pltpu.roll(g3[2:3], shift=L - W, axis=1)
    inner = jnp.concatenate([i_up, g3[1:2], i_dn], axis=0) * mR           # (3, L)
    o_ref[0] = jnp.sum(inner, axis=0, keepdims=True)                      # lane-dense store


def crr_forward(x, weight, *, lane_target=8192):
    """x: (N, 1, H, W) f32.  weight: (C_out, 1, 3, 3) f32 (PyTorch OIHW layout)."""
    N, Cin, H, W = x.shape
    assert Cin == 1 and weight.shape[1:] == (1, K, K)
    Cout = weight.shape[0]
    HW = H * W

    # images per grid step: bound the (Cout, L) f32 intermediate (~2 MB at 8192 lanes) and keep
    # at least 2 grid blocks whenever N >= 2 so the "parallel" axis shards over v7x's 2 cores.
    b_tile = max(1, lane_target // HW)
    if N >= 2:
        b_tile = min(b_tile, (N + 1) // 2)
    b_tile = min(b_tile, N)
    n_blocks = -(-N // b_tile)
    Np = n_blocks * b_tile

    # lane width per step, padded up to a multiple of 128 for dense (unmasked) stores
    L_real = b_tile * HW
    L = -(-L_real // 128) * 128

    x2 = x[:, 0].reshape(N, HW)
    if Np != N:
        x2 = jnp.pad(x2, ((0, Np - N), (0, 0)))
    x3 = x2.reshape(n_blocks, L_real)
    if L != L_real:
        x3 = jnp.pad(x3, ((0, 0), (0, L - L_real)))
    x3 = x3.reshape(n_blocks, 1, L)

    # tap order inside the kernel is k' = dc*3 + dr; permute the weights to match.
    #   forward:  W1p[c, k'] = weight[c, 0, dr+1, dc+1]
    #   adjoint:  W2p[k', c] = weight[c, 0, 1-dr, 1-dc]   (spatially flipped)
    w1 = weight[:, 0].reshape(Cout, K * K)
    perm = np.array([a * K + b for b in range(K) for a in range(K)])   # k'=b*3+a -> k=a*3+b
    w1p = w1[:, perm]
    w2p = w1[:, ::-1][:, perm].T

    masks = jnp.asarray(_sep_masks(H, W, b_tile, L))

    cost = pl.CostEstimate(
        flops=int(n_blocks * 4 * Cout * K * K * L),
        transcendentals=0,
        bytes_accessed=int(n_blocks * 8 * L + 4 * (6 * L + 2 * Cout * K * K)),
    )

    out3 = pl.pallas_call(
        functools.partial(crr_forward_kernel, W=W),
        out_shape=jax.ShapeDtypeStruct((n_blocks, 1, L), jnp.float32),
        grid_spec=pltpu.PrefetchScalarGridSpec(
            num_scalar_prefetch=0,
            grid=(n_blocks,),
            in_specs=[
                pl.BlockSpec((1, 1, L), lambda n: (n, 0, 0)),
                pl.BlockSpec((Cout, K * K), lambda n: (0, 0)),
                pl.BlockSpec((K * K, Cout), lambda n: (0, 0)),
                pl.BlockSpec((6, L), lambda n: (0, 0)),
            ],
            out_specs=pl.BlockSpec((1, 1, L), lambda n: (n, 0, 0)),
        ),
        compiler_params=pltpu.CompilerParams(dimension_semantics=("parallel",)),
        cost_estimate=cost,
    )(x3, w1p, w2p, masks)

    out = out3.reshape(n_blocks, L)[:, :L_real].reshape(Np, HW)[:N].reshape(N, 1, H, W)
    return out


def crr_forward_reference(x, weight):
    """Pure-JAX reference: conv -> relu -> adjoint conv (channel-swapped, spatially flipped)."""
    dn = lax.conv_dimension_numbers(x.shape, weight.shape, ("NCHW", "OIHW", "NCHW"))
    y = lax.conv_general_dilated(x, weight, (1, 1), ((PAD, PAD), (PAD, PAD)),
                                 dimension_numbers=dn, precision=lax.Precision.HIGHEST)
    y = jnp.maximum(y, 0.0)
    wt = jnp.transpose(weight, (1, 0, 2, 3))[:, :, ::-1, ::-1]
    dn2 = lax.conv_dimension_numbers(y.shape, wt.shape, ("NCHW", "OIHW", "NCHW"))
    out = lax.conv_general_dilated(y, wt, (1, 1), ((PAD, PAD), (PAD, PAD)),
                                   dimension_numbers=dn2, precision=lax.Precision.HIGHEST)
    return out


if __name__ == "__main__":
    key = jax.random.PRNGKey(0)
    kx, kw = jax.random.split(key)

    # small shapes consistent with the module defaults (channels=[1, 64], kernel_size=3, pad=1)
    N, Cin, H, W = 2, 1, 16, 16
    Cout = 64

    x = jax.random.normal(kx, (N, Cin, H, W), dtype=jnp.float32)
    # deterministic synthetic conv weight, PyTorch OIHW layout (64, 1, 3, 3)
    weight = 0.1 * jax.random.normal(kw, (Cout, Cin, K, K), dtype=jnp.float32)

    out = crr_forward(x, weight)
    out = jax.block_until_ready(out)
    assert out.shape == (N, 1, H, W)

    ref = crr_forward_reference(x, weight)
    # tolerance accommodates the MXU's reduced-precision f32 handling; a logic/mask bug would
    # produce O(0.1-1) errors, far above this threshold.
    np.testing.assert_allclose(np.asarray(out), np.asarray(ref), rtol=2e-2, atol=2e-2)

    print("KERNEL_OK")
</pallas_src>

<mosaic_0001>
module attributes {stable_mosaic.version = 11 : i64} {
  func.func @crr_forward_kernel(%arg0: i32, %arg1: memref<1x1x256xf32, #tpu.memory_space<vmem>>, %arg2: memref<64x9xf32, #tpu.memory_space<vmem>>, %arg3: memref<9x64xf32, #tpu.memory_space<vmem>>, %arg4: memref<6x256xf32, #tpu.memory_space<vmem>>, %arg5: memref<1x1x256xf32, #tpu.memory_space<vmem>>) attributes {dimension_semantics = [#tpu.dimension_semantics<parallel>], iteration_bounds = array<i64: 2>, scalar_prefetch = 0 : i64, scratch_operands = 0 : i64, tpu.core_type = #tpu.core_type<tc>, window_params = [{transform_indices = @transform_0, window_bounds = array<i64: 1, 1, 256>}, {pipeline_mode = #tpu.pipeline_mode<synchronous>, transform_indices = @transform_1, window_bounds = array<i64: 64, 9>}, {pipeline_mode = #tpu.pipeline_mode<synchronous>, transform_indices = @transform_2, window_bounds = array<i64: 9, 64>}, {pipeline_mode = #tpu.pipeline_mode<synchronous>, transform_indices = @transform_3, window_bounds = array<i64: 6, 256>}, {transform_indices = @transform_4, window_bounds = array<i64: 1, 1, 256>}]} {
    %c0 = arith.constant 0 : index
    %c0_0 = arith.constant 0 : index
    %c0_1 = arith.constant 0 : index
    %0 = vector.load %arg1[%c0, %c0_0, %c0_1] : memref<1x1x256xf32, #tpu.memory_space<vmem>>, vector<1x1x256xf32>
    %1 = vector.shape_cast %0 : vector<1x1x256xf32> to vector<1x256xf32>
    %c0_2 = arith.constant 0 : index
    %c0_3 = arith.constant 0 : index
    %2 = vector.load %arg4[%c0_2, %c0_3] : memref<6x256xf32, #tpu.memory_space<vmem>>, vector<6x256xf32>
    %3 = vector.extract_strided_slice %2 {offsets = [0, 0], sizes = [3, 256], strides = [1, 1]} : vector<6x256xf32> to vector<3x256xf32>
    %4 = vector.extract_strided_slice %2 {offsets = [3, 0], sizes = [3, 256], strides = [1, 1]} : vector<6x256xf32> to vector<3x256xf32>
    %c16_i32 = arith.constant 16 : i32
    %5 = tpu.dynamic_rotate %1 by %c16_i32 dim 1 : vector<1x256xf32>, i32 -> vector<1x256xf32>
    %c240_i32 = arith.constant 240 : i32
    %6 = tpu.dynamic_rotate %1 by %c240_i32 dim 1 : vector<1x256xf32>, i32 -> vector<1x256xf32>
    %7 = tpu.concatenate %5, %1, %6 in 0 : vector<1x256xf32>, vector<1x256xf32>, vector<1x256xf32> -> vector<3x256xf32>
    %8 = arith.mulf %7, %3 : vector<3x256xf32>
    %c1_i32 = arith.constant 1 : i32
    %9 = tpu.dynamic_rotate %8 by %c1_i32 dim 1 : vector<3x256xf32>, i32 -> vector<3x256xf32>
    %10 = vector.extract_strided_slice %4 {offsets = [0, 0], sizes = [1, 256], strides = [1, 1]} : vector<3x256xf32> to vector<1x256xf32>
    %11 = vector.broadcast %10 : vector<1x256xf32> to vector<3x256xf32>
    %12 = arith.mulf %9, %11 : vector<3x256xf32>
    %c255_i32 = arith.constant 255 : i32
    %13 = tpu.dynamic_rotate %8 by %c255_i32 dim 1 : vector<3x256xf32>, i32 -> vector<3x256xf32>
    %14 = vector.extract_strided_slice %4 {offsets = [2, 0], sizes = [1, 256], strides = [1, 1]} : vector<3x256xf32> to vector<1x256xf32>
    %15 = vector.broadcast %14 : vector<1x256xf32> to vector<3x256xf32>
    %16 = arith.mulf %13, %15 : vector<3x256xf32>
    %17 = vector.extract_strided_slice %4 {offsets = [1, 0], sizes = [1, 256], strides = [1, 1]} : vector<3x256xf32> to vector<1x256xf32>
    %18 = vector.broadcast %17 : vector<1x256xf32> to vector<3x256xf32>
    %19 = arith.mulf %8, %18 : vector<3x256xf32>
    %20 = tpu.concatenate %12, %19, %16 in 0 : vector<3x256xf32>, vector<3x256xf32>, vector<3x256xf32> -> vector<9x256xf32>
    %c0_4 = arith.constant 0 : index
    %c0_5 = arith.constant 0 : index
    %21 = vector.load %arg2[%c0_4, %c0_5] : memref<64x9xf32, #tpu.memory_space<vmem>>, vector<64x9xf32>
    %cst = arith.constant dense<0.000000e+00> : vector<64x256xf32>
    %22 = tpu.matmul %21, %20, %cst {dimension_numbers = #tpu.dot_dimension_numbers<[1], [0], [0], [1], [0, 0, 1, 1], [], []>} : vector<64x9xf32>, vector<9x256xf32>, vector<64x256xf32> -> vector<64x256xf32>
    %cst_6 = arith.constant 0.000000e+00 : f32
    %23 = vector.broadcast %cst_6 : f32 to vector<64x256xf32>
    %24 = arith.maximumf %22, %23 : vector<64x256xf32>
    %c0_7 = arith.constant 0 : index
    %c0_8 = arith.constant 0 : index
    %25 = vector.load %arg3[%c0_7, %c0_8] : memref<9x64xf32, #tpu.memory_space<vmem>>, vector<9x64xf32>
    %cst_9 = arith.constant dense<0.000000e+00> : vector<9x256xf32>
    %26 = tpu.matmul %25, %24, %cst_9 {dimension_numbers = #tpu.dot_dimension_numbers<[1], [0], [0], [1], [0, 0, 1, 1], [], []>} : vector<9x64xf32>, vector<64x256xf32>, vector<9x256xf32> -> vector<9x256xf32>
    %27 = vector.extract_strided_slice %26 {offsets = [0, 0], sizes = [3, 256], strides = [1, 1]} : vector<9x256xf32> to vector<3x256xf32>
    %c1_i32_10 = arith.constant 1 : i32
    %28 = tpu.dynamic_rotate %27 by %c1_i32_10 dim 1 : vector<3x256xf32>, i32 -> vector<3x256xf32>
    %29 = vector.extract_strided_slice %4 {offsets = [0, 0], sizes = [1, 256], strides = [1, 1]} : vector<3x256xf32> to vector<1x256xf32>
    %30 = vector.broadcast %29 : vector<1x256xf32> to vector<3x256xf32>
    %31 = arith.mulf %28, %30 : vector<3x256xf32>
    %32 = vector.extract_strided_slice %26 {offsets = [6, 0], sizes = [3, 256], strides = [1, 1]} : vector<9x256xf32> to vector<3x256xf32>
    %c255_i32_11 = arith.constant 255 : i32
    %33 = tpu.dynamic_rotate %32 by %c255_i32_11 dim 1 : vector<3x256xf32>, i32 -> vector<3x256xf32>
    %34 = vector.extract_strided_slice %4 {offsets = [2, 0], sizes = [1, 256], strides = [1, 1]} : vector<3x256xf32> to vector<1x256xf32>
    %35 = vector.broadcast %34 : vector<1x256xf32> to vector<3x256xf32>
    %36 = arith.mulf %33, %35 : vector<3x256xf32>
    %37 = vector.extract_strided_slice %26 {offsets = [3, 0], sizes = [3, 256], strides = [1, 1]} : vector<9x256xf32> to vector<3x256xf32>
    %38 = vector.extract_strided_slice %4 {offsets = [1, 0], sizes = [1, 256], strides = [1, 1]} : vector<3x256xf32> to vector<1x256xf32>
    %39 = vector.broadcast %38 : vector<1x256xf32> to vector<3x256xf32>
    %40 = arith.mulf %37, %39 : vector<3x256xf32>
    %41 = arith.addf %31, %40 : vector<3x256xf32>
    %42 = arith.addf %41, %36 : vector<3x256xf32>
    %43 = vector.extract_strided_slice %42 {offsets = [0, 0], sizes = [1, 256], strides = [1, 1]} : vector<3x256xf32> to vector<1x256xf32>
    %c16_i32_12 = arith.constant 16 : i32
    %44 = tpu.dynamic_rotate %43 by %c16_i32_12 dim 1 : vector<1x256xf32>, i32 -> vector<1x256xf32>
    %45 = vector.extract_strided_slice %42 {offsets = [2, 0], sizes = [1, 256], strides = [1, 1]} : vector<3x256xf32> to vector<1x256xf32>
    %c240_i32_13 = arith.constant 240 : i32
    %46 = tpu.dynamic_rotate %45 by %c240_i32_13 dim 1 : vector<1x256xf32>, i32 -> vector<1x256xf32>
    %47 = vector.extract_strided_slice %42 {offsets = [1, 0], sizes = [1, 256], strides = [1, 1]} : vector<3x256xf32> to vector<1x256xf32>
    %48 = tpu.concatenate %44, %47, %46 in 0 : vector<1x256xf32>, vector<1x256xf32>, vector<1x256xf32> -> vector<3x256xf32>
    %49 = arith.mulf %48, %3 : vector<3x256xf32>
    %cst_14 = arith.constant dense<0.000000e+00> : vector<256xf32>
    %50 = vector.multi_reduction <add>, %49, %cst_14 [0] : vector<3x256xf32> to vector<256xf32>
    %51 = vector.shape_cast %50 : vector<256xf32> to vector<1x256xf32>
    %c0_15 = arith.constant 0 : index
    %c0_16 = arith.constant 0 : index
    %c0_17 = arith.constant 0 : index
    %52 = vector.load %arg5[%c0_15, %c0_16, %c0_17] : memref<1x1x256xf32, #tpu.memory_space<vmem>>, vector<1x1x256xf32>
    %53 = vector.shape_cast %52 : vector<1x1x256xf32> to vector<1x256xf32>
    %54 = vector.shape_cast %51 : vector<1x256xf32> to vector<1x1x256xf32>
    tpu.vector_store %arg5[%c0_15, %c0_16, %c0_17], %54 {strides = array<i32>} : memref<1x1x256xf32, #tpu.memory_space<vmem>>, vector<1x1x256xf32>,
    return
  }
  func.func @transform_0(%arg0: i32) -> (i32, i32, i32) {
    %c0_i32 = arith.constant 0 : i32
    %c0_i32_0 = arith.constant 0 : i32
    %c0_i32_1 = arith.constant 0 : i32
    return %arg0, %c0_i32, %c0_i32_0 : i32, i32, i32
  }
  func.func @transform_1(%arg0: i32) -> (i32, i32) {
    %c0_i32 = arith.constant 0 : i32
    %c0_i32_0 = arith.constant 0 : i32
    %c0_i32_1 = arith.constant 0 : i32
    return %c0_i32, %c0_i32_0 : i32, i32
  }
  func.func @transform_2(%arg0: i32) -> (i32, i32) {
    %c0_i32 = arith.constant 0 : i32
    %c0_i32_0 = arith.constant 0 : i32
    %c0_i32_1 = arith.constant 0 : i32
    return %c0_i32, %c0_i32_0 : i32, i32
  }
  func.func @transform_3(%arg0: i32) -> (i32, i32) {
    %c0_i32 = arith.constant 0 : i32
    %c0_i32_0 = arith.constant 0 : i32
    %c0_i32_1 = arith.constant 0 : i32
    return %c0_i32, %c0_i32_0 : i32, i32
  }
  func.func @transform_4(%arg0: i32) -> (i32, i32, i32) {
    %c0_i32 = arith.constant 0 : i32
    %c0_i32_0 = arith.constant 0 : i32
    %c0_i32_1 = arith.constant 0 : i32
    return %arg0, %c0_i32, %c0_i32_0 : i32, i32, i32
  }
}

</mosaic_0001>

<bundles_post_ra>
// kernel: tpu_custom_call.1
= control target key start
LH: loop header
LB: loop body
LE: loop exit
PB: predicated region body
PF: predicated region fallthrough
CT: control target
= control target key end

     0   :  { %9 = vsyncpa [#allocation3], 0  ;;  %s1193_s0 = inlined_call_operand.vmem [shape: f32[2,1,256], index: 0, kind: input, shape index: {}]   ;;  %s1194_s1 = inlined_call_operand.vmem [shape: f32[64,9], index: 1, kind: input, shape index: {}]   ;;  %s1195_s2 = inlined_call_operand.vmem [shape: f32[9,64], index: 2, kind: input, shape index: {}]   ;;  %s1196_s3 = inlined_call_operand.vmem [shape: f32[6,256], index: 3, kind: input, shape index: {}]   ;;  %s1197_s4 = inlined_call_operand.hbm [shape: f32[2,1,256], index: 4, kind: output, shape index: {}]  }
   0x1   :  { %11 = vsyncpa [#allocation3 + $0x1], 0  ;;  %s921_s15 = smov 0   ;;  %s923_s16 = smov 0  }
   0x2   :  { %s925_s17 = smov 0   ;;  %s927_s18 = smov 0  }
   0x3 LB: > { %s942_s19 = sadd.s32 4294967295, %s886_s18   ;;  %s732_s20 = sadd.s32 4294967294, %s886_s18   ;;  %s886_s18 = sphi %s927_s18, %s1203_s18   ;;  %s882_s17 = sphi %s925_s17, %s1202_s17   ;;  %s878_s16 = sphi %s923_s16, %s1201_s16   ;;  %s874_s15 = sphi %s921_s15, %s1200_s15  }
   0x4   : > { %s946_s21 = sadd.s32 1, %s886_s18   ;;  %s113_s22 = sadd.s32 1, %s882_s17 }
   0x5   : > { %s110_s23 = ssub.s32 %s886_s18, %s946_s21  ;;  %p123_p0 = scmp.ne.s32.totalorder %s882_s17, %s878_s16 }
   0x6   : > { %p111_p1 = scmp.eq.s32.totalorder %s110_s23, 0  ;;  %p124_p2 = scmp.eq.s32.totalorder %s942_s19, 1 }
   0x7   : > { %p129_p3 = scmp.ne.s32.totalorder %s878_s16, %s874_s15  ;;  %p130_p4 = scmp.eq.s32.totalorder %s732_s20, 1 }
   0x8   : > { %s957_s24 = scalar_select %p111_p1, %s882_s17, %s113_s22  }
   0x9   : > { %p959_p5 = por %p124_p2, %p123_p0  ;;  %p963_p6 = por %p130_p4, %p129_p3 }
   0xa   : > { %p735_p7 = scmp.ge.s32.totalorder %s886_s18, 1  ;;  %p164_p8 = scmp.lt.s32.totalorder %s886_s18, 3 }
   0xc   : > { %p165_p9 = pnand %p735_p7, %p164_p8 }
   0xd   : > { %p189_p10 = scmp.lt.s32.totalorder (!%p165_p9), %s942_s19, 1  ;;  %v197_v0 = vlaneseq (!%p165_p9)  ;;  %s888_s6 = smov (!%p165_p9), 16   ;;  %vm229_vm2 = vcmask (!%p165_p9), 1040384   ;;  %vm232_vm3 = vcmask (!%p165_p9), 1041408   ;;  %v1001_v20 = vld [vmem:[%s1196_s3 + $0x8] sm:$0x3f] (!%p165_p9) }
   0xe   : > { %168 = sbr.rel (%p165_p9) target bundleno = 1031 (0x407), region = 36  ;;  %s889_s7 = smov (!%p165_p9), 112   ;;  %v1006_v21 = vld [vmem:[%s1196_s3] sm:$0x3f] (!%p165_p9)  ;;  %v891_v26 = vmov (!%p165_p9), 0.0   ;;  %vm293_vm6 = vcmask (!%p165_p9), 1042432  }
   0xf   : > { %v972_v1 = vshrl.u32 (!%p165_p9), %v197_v0, 7  ;;  %v984_v7 = vand.u32 (!%p165_p9), 127, %v197_v0  ;;  %s890_s12 = smov (!%p165_p9), 127   ;;  %400 = vmatprep.mubr.f32.mxu0 (!%p165_p9), %v891_v26  ;;  %538 = vmatprep.mubr.f32.mxu1 (!%p165_p9), %v891_v26  ;;  %s892_s13 = smov (!%p165_p9), 1   ;;  %vm296_vm7 = vcmask (!%p165_p9), 1045504   ;;  %vm893_vm8 = vmmov (!%p165_p9), 1  }
  0x10   : > { %vm757_vm9 = vmpackc.low (!%p165_p9), %vm229_vm2, %vm893_vm8  ;;  %v299_v60 = vld [vmem:[%s1194_s1] sm:$0xff] (!%p165_p9)  ;;  %vm307_vm10 = vcmask (!%p165_p9), 72704   ;;  %v300_v61 = vld [vmem:[%s1194_s1 + $0x8] sm:$0xff] (!%p165_p9)  ;;  %vm467_vm11 = vcmask (!%p165_p9), 523264   ;;  %vm655_vm12 = vcmp.lt.s32.totalorder (!%p165_p9), %v197_v0, 256 }
  0x11   : > { %v199_v2 = vsub.s32 (!%p165_p9), 0, %v972_v1  ;;  %v203_v3 = vsub.s32 (!%p165_p9), 1, %v972_v1  ;;  %vm213_vm0 = vcmp.lt.s32.totalorder (!%p165_p9), %v984_v7, 16  ;;  %vm220_vm1 = vcmp.lt.s32.totalorder (!%p165_p9), %v984_v7, 112  ;;  %v301_v62 = vld [vmem:[%s1194_s1 + $0x10] sm:$0xff] (!%p165_p9)  ;;  %v302_v63 = vld [vmem:[%s1194_s1 + $0x18] sm:$0xff] (!%p165_p9) }
  0x12   : > { %v273_v27 = vsub.s32 (!%p165_p9), 4, %v972_v1  ;;  %v263_v28 = vsub.s32 (!%p165_p9), 5, %v972_v1  ;;  %vm258_vm4 = vcmp.lt.s32.totalorder (!%p165_p9), %v984_v7, 127  ;;  %v246_v31 = vsub.s32 (!%p165_p9), 3, %v972_v1 }
  0x13   : > { %vm241_vm5 = vcmp.lt.s32.totalorder (!%p165_p9), %v984_v7, 1 }
  0x14   : > { %v1021_v29 = vrot.slane (!%p165_p9), %v1001_v20, %v273_v27  ;;  %v1024_v30 = vrot.slane (!%p165_p9), %v1006_v21, %v273_v27  ;;  %v1029_v32 = vrot.slane (!%p165_p9), %v1006_v21, %v263_v28  ;;  %v1032_v33 = vrot.slane (!%p165_p9), %v1001_v20, %v263_v28 }
  0x15   : > { %s190_s27 = scalar_select %p189_p10, %s942_s19, 1  ;;  %v1042_v40 = vrot.slane %v1006_v21, %v246_v31  ;;  %v1045_v41 = vrot.slane %v1001_v20, %v246_v31 }
  0x17   : > { %s737_s28 = sshll.u32 %s190_s27, 1 }
  0x18   : > { %s192_s5 = scalar_lea.vmem %s1193_s0, %s737_s28 }
  0x19   : > { %v193_v4 = vld [vmem:[%s192_s5] sm:$0x3] }
  0x1a   : > { %v200_v5 = vrot.slane %v193_v4, %v199_v2  ;;  %v204_v6 = vrot.slane %v193_v4, %v203_v3  ;;  %v303_v2 = vld [vmem:[%s1194_s1 + $0x20] sm:$0xff]  ;;  %v304_v3 = vld [vmem:[%s1194_s1 + $0x28] sm:$0xff]  ;;  %v305_v4 = vld [vmem:[%s1194_s1 + $0x30] sm:$0xff] }
  0x1c   : > { %207 = vrot.lane.b32.xlu1 %v200_v5, %s888_s6  ;;  %216 = vrot.lane.b32.xlu0 %v200_v5, %s889_s7 }
  0x20   : > { %209 = vrot.lane.b32.xlu1 %v204_v6, %s888_s6  ;;  %218 = vrot.lane.b32.xlu0 %v204_v6, %s889_s7 }
  0x8e   : > { %v208_v8 = vpop.permute.xlu1 %207  ;;  %v217_v9 = vpop.permute.xlu0 %216 }
  0x92   : > { %v210_v10 = vpop.permute.xlu1 %209  ;;  %v219_v11 = vpop.permute.xlu0 %218 }
  0x93   : > { %v214_v12 = vsel %vm213_vm0, %v208_v8, %v210_v10  ;;  %v215_v13 = vsel %vm213_vm0, %v210_v10, %v208_v8  ;;  %v221_v14 = vsel %vm220_vm1, %v217_v9, %v219_v11  ;;  %v222_v15 = vsel %vm220_vm1, %v219_v11, %v217_v9 }
  0x94   : > { %v230_v16 = vsel %vm229_vm2, %v215_v13, %v200_v5  ;;  %v231_v17 = vsel %vm229_vm2, %v214_v12, %v204_v6  ;;  %v225_v18 = vrot.slane %v221_v14, 6  ;;  %v226_v19 = vrot.slane %v222_v15, 6  ;;  %v306_v5 = vld [vmem:[%s1194_s1 + $0x38] sm:$0xff] }
  0x96   : > { %v234_v22 = vsel %vm232_vm3, %v231_v17, %v226_v19  ;;  %v233_v23 = vsel %vm232_vm3, %v230_v16, %v225_v18 }
  0x97   : > { %v236_v24 = vmul.f32 %v234_v22, %v1001_v20  ;;  %v235_v25 = vmul.f32 %v233_v23, %v1006_v21 }
  0x99   : > { %256 = vrot.lane.b32.xlu1 %v236_v24, %s890_s12  ;;  %254 = vrot.lane.b32.xlu0 %v235_v25, %s890_s12  ;;  %v280_v38 = vmul.f32 %v1021_v29, %v236_v24  ;;  %v279_v39 = vmul.f32 %v1024_v30, %v235_v25 }
  0x9b   : > { %v284_v48 = vrot.slane %v280_v38, 5  ;;  %v283_v49 = vrot.slane %v279_v39, 5 }
  0x9d   : > { %239 = vrot.lane.b32.xlu1 %v236_v24, %s892_s13  ;;  %237 = vrot.lane.b32.xlu0 %v235_v25, %s892_s13 }
 0x10b   : > { %v257_v34 = vpop.permute.xlu1 %256  ;;  %v255_v35 = vpop.permute.xlu0 %254 }
 0x10c   : > { %v259_v36 = vsel %vm258_vm4, %v255_v35, %v257_v34  ;;  %v260_v37 = vsel %vm258_vm4, %v257_v34, %v255_v35 }
 0x10d   : > { %v269_v42 = vmul.f32 %v1029_v32, %v259_v36  ;;  %v270_v43 = vmul.f32 %v1032_v33, %v260_v37 }
 0x10f   : > { %v240_v44 = vpop.permute.xlu1 %239  ;;  %v238_v45 = vpop.permute.xlu0 %237  ;;  %v289_v52 = vrot.slane %v269_v42, 2  ;;  %v290_v53 = vrot.slane %v270_v43, 2 }
 0x110   : > { %v242_v46 = vsel %vm241_vm5, %v238_v45, %v240_v44  ;;  %v243_v47 = vsel %vm241_vm5, %v240_v44, %v238_v45 }
 0x111   : > { %v252_v50 = vmul.f32 %v1042_v40, %v243_v47  ;;  %v253_v51 = vmul.f32 %v1045_v41, %v242_v46 }
 0x113   : > { %v295_v54 = vsel %vm293_vm6, %v253_v51, %v284_v48  ;;  %v294_v55 = vsel %vm293_vm6, %v252_v50, %v283_v49 }
 0x114   : > { %v298_v56 = vsel %vm296_vm7, %v295_v54, %v290_v53  ;;  %v297_v57 = vsel %vm296_vm7, %v294_v55, %v289_v52 }
 0x115   : > { %v756_v58 = vpack.c.bf16 %v290_v53, %v298_v56  ;;  %v759_v59 = vpack.c.bf16 %v289_v52, %v297_v57  ;;  %v465_v56 = vld [vmem:[%s1195_s2] sm:$0xff]  ;;  %v466_v57 = vld [vmem:[%s1195_s2 + $0x8] sm:$0x1] }
 0x117   : > { %758 = vmatprep.subr.msk.bf16.mxu0 %vm757_vm9, %v756_v58 }
 0x118   : > { %761 = vmatpush1.bf16.msk.msra.mxu0 %vm757_vm9, %v759_v59 }
 0x11b   : > { %740 = vmatmul.mubr.msk.f32.vlgmr.msra.gmra.mrb[0].mxu0 %vm307_vm10, %v299_v60 }
 0x11c   : > { %406 = vmatprep.mubr.f32.mxu0 %v891_v26 }
 0x11f   : > { %741 = vmatmul.mubr.msk.f32.gmra.mrb[2].mxu0 %vm307_vm10, %v300_v61 }
 0x120   : > { %412 = vmatprep.mubr.f32.mxu0 %v891_v26 }
 0x123   : > { %742 = vmatmul.mubr.msk.f32.gmra.mrb[4].mxu0 %vm307_vm10, %v301_v62 }
 0x124   : > { %418 = vmatprep.mubr.f32.mxu0 %v891_v26 }
 0x127   : > { %743 = vmatmul.mubr.msk.f32.gmra.mrb[6].mxu0 %vm307_vm10, %v302_v63 }
 0x128   : > { %424 = vmatprep.mubr.f32.mxu0 %v891_v26 }
 0x12b   : > { %744 = vmatmul.mubr.msk.f32.gmra.mrb[8].mxu0 %vm307_vm10, %v303_v2 }
 0x12c   : > { %430 = vmatprep.mubr.f32.mxu0 %v891_v26 }
 0x12f   : > { %745 = vmatmul.mubr.msk.f32.gmra.mrb[10].mxu0 %vm307_vm10, %v304_v3 }
 0x130   : > { %436 = vmatprep.mubr.f32.mxu0 %v891_v26 }
 0x133   : > { %746 = vmatmul.mubr.msk.f32.gmra.mrb[12].mxu0 %vm307_vm10, %v305_v4 }
 0x134   : > { %442 = vmatprep.mubr.f32.mxu0 %v891_v26 }
 0x137   : > { %747 = vmatmul.mubr.msk.f32.gmra.mrb[14].mxu0 %vm307_vm10, %v306_v5 }
 0x1ee   : > { %v402_v6 = vpop.f32.mrb[0].mxu0 }
 0x1ef   : > { %v404_v8 = vpop.f32.mrb[1].mxu0  ;;  %v449_v10 = vmax.f32 %v402_v6, 0.0 }
 0x1f0   : > { %v450_v13 = vmax.f32 %v404_v8, 0.0 }
 0x1f2   : > { %v408_v9 = vpop.f32.mrb[2].mxu0 }
 0x1f3   : > { %v451_v11 = vmax.f32 %v408_v9, 0.0  ;;  %v410_v12 = vpop.f32.mrb[3].mxu0 }
 0x1f4   : > { %v452_v14 = vmax.f32 %v410_v12, 0.0 }
 0x1f5   : > { %v764_v15 = vpack.c.bf16 %v451_v11, %v449_v10 }
 0x1f6   : > { %v414_v16 = vpop.f32.mrb[4].mxu0  ;;  %v762_v17 = vpack.c.bf16 %v452_v14, %v450_v13 }
 0x1f7   : > { %v416_v18 = vpop.f32.mrb[5].mxu0  ;;  %v453_v22 = vmax.f32 %v414_v16, 0.0 }
 0x1f8   : > { %763 = vmatprep.subr.bf16.mxu1 %v762_v17  ;;  %v454_v25 = vmax.f32 %v416_v18, 0.0 }
 0x1f9   : > { %765 = vmatpush1.bf16.msra.mxu1 %v764_v15 }
 0x1fa   : > { %v420_v19 = vpop.f32.mrb[6].mxu0 }
 0x1fb   : > { %v455_v23 = vmax.f32 %v420_v19, 0.0  ;;  %v422_v24 = vpop.f32.mrb[7].mxu0 }
 0x1fc   : > { %v456_v27 = vmax.f32 %v422_v24, 0.0 }
 0x1fd   : > { %v768_v28 = vpack.c.bf16 %v455_v23, %v453_v22 }
 0x1fe   : > { %v766_v31 = vpack.c.bf16 %v456_v27, %v454_v25  ;;  %v426_v34 = vpop.f32.mrb[8].mxu0 }
 0x1ff   : > { %v428_v35 = vpop.f32.mrb[9].mxu0  ;;  %v457_v37 = vmax.f32 %v426_v34, 0.0 }
 0x200   : > { %767 = vmatprep.subr.bf16.mxu1 %v766_v31  ;;  %v458_v42 = vmax.f32 %v428_v35, 0.0 }
 0x201   : > { %769 = vmatpush1.bf16.msra.mxu1 %v768_v28 }
 0x202   : > { %v432_v36 = vpop.f32.mrb[10].mxu0 }
 0x203   : > { %v459_v38 = vmax.f32 %v432_v36, 0.0  ;;  %v434_v39 = vpop.f32.mrb[11].mxu0 }
 0x204   : > { %v460_v43 = vmax.f32 %v434_v39, 0.0 }
 0x205   : > { %v772_v44 = vpack.c.bf16 %v459_v38, %v457_v37 }
 0x206   : > { %v770_v45 = vpack.c.bf16 %v460_v43, %v458_v42  ;;  %v438_v46 = vpop.f32.mrb[12].mxu0 }
 0x207   : > { %v440_v47 = vpop.f32.mrb[13].mxu0  ;;  %v461_v49 = vmax.f32 %v438_v46, 0.0 }
 0x208   : > { %771 = vmatprep.subr.bf16.mxu1 %v770_v45  ;;  %v462_v52 = vmax.f32 %v440_v47, 0.0 }
 0x209   : > { %773 = vmatpush1.bf16.msra.mxu1 %v772_v44 }
 0x20a   : > { %v444_v48 = vpop.f32.mrb[14].mxu0 }
 0x20b   : > { %v463_v50 = vmax.f32 %v444_v48, 0.0  ;;  %v446_v51 = vpop.f32.mrb[15].mxu0 }
 0x20c   : > { %v464_v53 = vmax.f32 %v446_v51, 0.0 }
 0x20d   : > { %v776_v54 = vpack.c.bf16 %v463_v50, %v461_v49 }
 0x20e   : > { %v774_v55 = vpack.c.bf16 %v464_v53, %v462_v52  ;;  %v894_v52 = vmov 1966171168  }
 0x20f   : > { %v639_v53 = vunpack.c.l.s4 %v894_v52 }
 0x210   : > { %775 = vmatprep.subr.bf16.mxu1 %v774_v55 }
 0x211   : > { %777 = vmatpush1.bf16.msra.mxu1 %v776_v54 }
 0x214   : > { %748 = vmatmul.mubr.msk.f32.vlgmr.msra.gmra.mrb[0].mxu1 %vm467_vm11, %v465_v56 }
 0x215   : > { %544 = vmatprep.mubr.f32.mxu1 %v891_v26 }
 0x218   : > { %749 = vmatmul.mubr.msk.f32.gmra.mrb[2].mxu1 %vm467_vm11, %v466_v57 }
 0x2e7   : > { %v540_v58 = vpop.f32.mrb[0].mxu1 }
 0x2e8   : > { %551 = vrot.lane.b32.xlu0 %v540_v58, %s892_s13  ;;  %v542_v59 = vpop.f32.mrb[1].mxu1  ;;  %v563_v61 = vrot.slane %v540_v58, 6  ;;  %v579_v10 = vmul.f32 %v540_v58, %v1024_v30  ;;  %v640_v58 = vunpack.c.0.s8 %v639_v53 }
 0x2e9   : > { %553 = vrot.lane.b32.xlu1 %v542_v59, %s892_s13  ;;  %v566_v2 = vrot.slane %v542_v59, 6  ;;  %v580_v11 = vmul.f32 %v542_v59, %v1021_v29 }
 0x2ea   : > { %v583_v15 = vrot.slane %v579_v10, 3 }
 0x2eb   : > { %v546_v60 = vpop.f32.mrb[2].mxu1  ;;  %v584_v16 = vrot.slane %v580_v11, 3 }
 0x2ec   : > { %v564_v62 = vrot.slane %v546_v60, 6  ;;  %v548_v63 = vpop.f32.mrb[3].mxu1 }
 0x2ed   : > { %v567_v3 = vrot.slane %v548_v63, 6 }
 0x2ee   : > { %v565_v4 = vsel %vm232_vm3, %v563_v61, %v564_v62  ;;  %v643_v61 = vsub.s32 %v640_v58, %v972_v1 }
 0x2ef   : > { %571 = vrot.lane.b32.xlu0 %v565_v4, %s890_s12  ;;  %v568_v26 = vsel %vm232_vm3, %v566_v2, %v567_v3 }
 0x2f0   : > { %573 = vrot.lane.b32.xlu1 %v568_v26, %s890_s12  ;;  %s755_s12 = sshll.u32 %s942_s19, 5  ;;  %s895_s19 = smov [#allocation2]  }
 0x2f1   : > { %s1151_s9 = scalar_lea.hbm %s1197_s4, %s755_s12  ;;  %s828_s14 = sshll.u32 %s895_s19, 4  ;;  %s829_s14 = int_to_ptr.vmem [resolvable:$false] %s828_s14 }
 0x2f2   : > { %s830_s20 = scalar_lea.vmem %s829_s14, 64 }
 0x35a   : > { %v552_v5 = vpop.permute.xlu0 %551 }
 0x35b   : > { %v554_v6 = vpop.permute.xlu1 %553 }
 0x35c   : > { %v555_v8 = vsel %vm241_vm5, %v552_v5, %v554_v6  ;;  %v556_v9 = vsel %vm241_vm5, %v554_v6, %v552_v5 }
 0x35d   : > { %v557_v12 = vmul.f32 %v556_v9, %v1042_v40  ;;  %v558_v13 = vmul.f32 %v555_v8, %v1045_v41 }
 0x35f   : > { %v587_v22 = vadd.f32 %v583_v15, %v557_v12  ;;  %v588_v23 = vadd.f32 %v584_v16, %v558_v13 }
 0x361   : > { %v572_v14 = vpop.permute.xlu0 %571 }
 0x362   : > { %v574_v17 = vpop.permute.xlu1 %573 }
 0x363   : > { %v575_v18 = vsel %vm258_vm4, %v572_v14, %v574_v17  ;;  %v576_v19 = vsel %vm258_vm4, %v574_v17, %v572_v14 }
 0x364   : > { %v577_v30 = vmul.f32 %v575_v18, %v1029_v32  ;;  %v578_v29 = vmul.f32 %v576_v19, %v1032_v33 }
 0x366   : > { %v589_v24 = vadd.f32 %v587_v22, %v577_v30  ;;  %v590_v40 = vadd.f32 %v588_v23, %v578_v29 }
 0x368   : > { %v600_v25 = vrot.slane %v590_v40, 2  ;;  %v599_v41 = vrot.slane %v589_v24, 2 }
 0x36a   : > { %605 = vrot.lane.b32.xlu1 %v600_v25, %s889_s7  ;;  %603 = vrot.lane.b32.xlu0 %v599_v41, %s889_s7 }
 0x36e   : > { %593 = vrot.lane.b32.xlu1 %v590_v40, %s888_s6  ;;  %591 = vrot.lane.b32.xlu0 %v589_v24, %s888_s6  ;;  %s186_s6 = sand.u32 1, %s878_s16  }
 0x36f   : > { %s736_s7 = sshll.u32 %s186_s6, 1  ;;  %s659_s10 = scalar_lea.sflag [#allocation3], %s186_s6 }
 0x370   : > { %s188_s13 = scalar_lea.vmem [#allocation2], %s736_s7 }
 0x371   : > { %s673_s30 = sshll.u32 %s188_s13, 4  ;;  %s1153_s30 = int_to_ptr.vmem [resolvable:$true] %s673_s30 }
 0x372   : > { %s824_s11 = scalar_lea.vmem %s1153_s30, 32  ;;  %p831_p0 = scmp.lt.s32.totalorder %s1153_s30, %s829_s14 }
 0x373   : > { %p825_p11 = scmp.ne.s32.totalorder %s1153_s30, %s824_s11  ;;  %p832_p1 = scmp.lt.s32.totalorder %s830_s20, %s824_s11 }
 0x375   : > { %p826_p12 = pnand %p825_p11, %p959_p5  ;;  %p833_p2 = por %p832_p1, %p831_p0 }
 0x377   : > { %p827_p13 = pneg %p826_p12 }
 0x379   : > { %p834_p3 = pnand %p833_p2, %p827_p13 }
 0x3dc   : > { %v606_v27 = vpop.permute.xlu1 %605  ;;  %v604_v28 = vpop.permute.xlu0 %603 }
 0x3dd   : > { %v607_v31 = vsel %vm220_vm1, %v604_v28, %v606_v27  ;;  %v608_v32 = vsel %vm220_vm1, %v606_v27, %v604_v28 }
 0x3de   : > { %v611_v35 = vrot.slane %v607_v31, 6  ;;  %v612_v36 = vrot.slane %v608_v32, 6 }
 0x3e0   : > { %v594_v33 = vpop.permute.xlu1 %593  ;;  %v592_v34 = vpop.permute.xlu0 %591 }
 0x3e1   : > { %v595_v37 = vsel %vm213_vm0, %v592_v34, %v594_v33  ;;  %v596_v38 = vsel %vm213_vm0, %v594_v33, %v592_v34 }
 0x3e2   : > { %v615_v39 = vsel %vm229_vm2, %v596_v38, %v589_v24  ;;  %v616_v42 = vsel %vm229_vm2, %v595_v37, %v590_v40 }
 0x3e3   : > { %v617_v43 = vsel %vm232_vm3, %v615_v39, %v611_v35  ;;  %v618_v44 = vsel %vm232_vm3, %v616_v42, %v612_v36 }
 0x3e4   : > { %v619_v45 = vmul.f32 %v617_v43, %v1006_v21  ;;  %v620_v46 = vmul.f32 %v618_v44, %v1001_v20 }
 0x3e6   : > { %v621_v47 = vsel %vm293_vm6, %v619_v45, 0.0  ;;  %v628_v48 = vsel %vm293_vm6, %v620_v46, 0.0 }
 0x3e7   : > { %v622_v49 = vrot.slane %v621_v47, 4  ;;  %v629_v7 = vrot.slane %v628_v48, 4 }
 0x3e9   : > { %v623_v50 = vadd.f32 %v622_v49, %v621_v47  ;;  %v630_v51 = vadd.f32 %v629_v7, %v628_v48 }
 0x3eb   : > { %v624_v54 = vrot.slane %v623_v50, 2  ;;  %v631_v55 = vrot.slane %v630_v51, 2 }
 0x3ed   : > { %v625_v56 = vadd.f32 %v624_v54, %v623_v50  ;;  %v632_v57 = vadd.f32 %v631_v55, %v630_v51 }
 0x3ef   : > { %v626_v21 = vrot.slane %v625_v56, 1  ;;  %v633_v20 = vrot.slane %v632_v57, 1 }
 0x3f1   : > { %v627_v59 = vadd.f32 %v626_v21, %v625_v56  ;;  %v634_v60 = vadd.f32 %v633_v20, %v632_v57 }
 0x3f3   : > { %v637_v62 = vcombine.low %v627_v59, %v634_v60 }
 0x3f5   : > { %v644_v63 = vrot.slane %v637_v62, %v643_v61 }
 0x3f7   : > { %v651_v2 = vrot.slane %v644_v63, %v643_v61 }
 0x3f9   : > { %657 = vst.msk [vmem:[%s188_s13] sm:$0x3] %vm655_vm12, %v651_v2 }
 0x3fa   : > { %837 = shalt.err (!%p834_p3)
}
 0x3fb   : > { %s838_s22 = scalar_lea.hbm %s1151_s9, 32  ;;  %s842_s28 = scalar_lea.hbm %s1197_s4, 64 }
 0x3fc   : > { %p839_p4 = scmp.ne.s32.totalorder %s1151_s9, %s838_s22  ;;  %p843_p9 = scmp.lt.u32.totalorder %s1151_s9, %s1197_s4 }
 0x3fd   : > { %p844_p10 = scmp.lt.u32.totalorder %s842_s28, %s838_s22  ;;  %p846_p12 = scmp.lt.u32.totalorder %s838_s22, %s1151_s9 }
 0x3fe   : > { %p840_p7 = pnand %p839_p4, %p959_p5 }
 0x3ff   : > { %p845_p11 = por %p844_p10, %p843_p9 }
 0x400   : > { %p841_p8 = pneg %p840_p7 }
 0x401   : > { %p847_p13 = por %p846_p12, %p845_p11 }
 0x403   : > { %p848_p0 = pnand %p847_p13, %p841_p8 }
 0x405   : > { %851 = shalt.err (!%p848_p0)
}
 0x406   : > { %778 = dma.vmem_to_hbm [thread:$0]  (%p959_p5), %s1153_s30, 32, %s1151_s9, %s659_s10  }
 0x407 PF: > { %p784_p1 = scmp.ge.s32.totalorder %s886_s18, 2  ;;  %s685_s7 = sand.u32 1, %s874_s15  }
 0x408   : > { %s686_s12 = scalar_lea.sflag [#allocation3], %s685_s7 }
 0x409   : > { %p781_p2 = pnand %p784_p1, %p963_p6 }
 0x40b   : > { %869 = dma.done.wait (!%p781_p2), %s686_s12, 32  }
 0x40c   : > { %871 = vsyncadd (!%p781_p2), %s686_s12, 4294967264  ;;  %p14_p3 = scmp.ge.s32.totalorder %s946_s21, 4   ;;  %s1200_s15 = smov %s878_s16 }
 0x40d   : > { %s1201_s16 = smov %s882_s17  ;;  %s1202_s17 = smov %s957_s24 }
 0x40e   : > { %s1203_s18 = smov %s946_s21  ;;  %16 = sbr.rel (!%p14_p3) target bundleno = 3 (0x3), region = 71 }
 0x415   :  { %691 = vsyncpa [#allocation3], 1 }
 0x416   :  { %693 = vsyncpa [#allocation3 + $0x1], 1 }

</bundles_post_ra>
